<compile_context>
chip_gen: v7x
topology: tpu7x:2x2x1
jax: 0.10.0
libtpu: 0.0.40
codegen_flags: <defaults>
</compile_context>

<pallas_src>
import functools

import jax
import jax.numpy as jnp
from jax.experimental import pallas as pl
from jax.experimental.pallas import tpu as pltpu


_TR_MAX = 8192                  # rows per streamed block: 8192*128*4B = 4 MiB f32
_FUSED_MAX_F32_BYTES = 4 << 20  # use the fused single-pass path below this size
_VMEM_LIMIT = 48 << 20          # explicit scoped-VMEM limit (safe on v5e/v6e/v7x)


# ----------------------------- kernels ------------------------------------ #

def _seu_fused_kernel(x_ref, o_ref, *, beta, tau):
    """Single-pass SEU: whole tensor resident in VMEM, one read + one write."""
    x = x_ref[...].astype(jnp.float32)
    dmin = jnp.min(x)
    dmax = jnp.max(x)
    inv_range = 1.0 / (dmax - dmin + 1e-8)
    d_norm = (x - dmin) * inv_range
    # 1 - F == d_norm ; M == (F > tau) == (d_norm < 1 - tau)
    out = x - beta * jnp.where(d_norm < (1.0 - tau), d_norm, 0.0)
    o_ref[...] = out.astype(o_ref.dtype)


def _minmax_partial_kernel(x_ref, min_ref, max_ref, *,
                           total_rows, block_rows, needs_row_mask):
    """Per-block min/max partials (two-level reduction, 'parallel' grid).

    Reduction runs in the input's native dtype; only the scalar results are
    cast to f32.  The ragged-row mask is applied on the last block only.
    """
    def write(bmin, bmax):
        min_ref[...] = jnp.full((1, 8, 128), bmin.astype(jnp.float32),
                                dtype=jnp.float32)
        max_ref[...] = jnp.full((1, 8, 128), bmax.astype(jnp.float32),
                                dtype=jnp.float32)

    x = x_ref[...]

    if needs_row_mask:
        i = pl.program_id(0)
        is_last = i == pl.num_programs(0) - 1

        @pl.when(jnp.logical_not(is_last))
        def _():
            write(jnp.min(x), jnp.max(x))

        @pl.when(is_last)
        def _():
            # Rows past `total_rows` in the final block hold undefined data.
            row_ids = jax.lax.broadcasted_iota(jnp.int32, x.shape, 0)
            valid = row_ids < (total_rows - i * block_rows)
            write(jnp.min(jnp.where(valid, x, jnp.inf)),
                  jnp.max(jnp.where(valid, x, -jnp.inf)))
    else:
        write(jnp.min(x), jnp.max(x))


def _seu_kernel(s_ref, x_ref, o_ref, *, beta, tau):
    """Elementwise SEU refinement; s_ref = [dmin, inv_range] in SMEM."""
    dmin = s_ref[0]
    inv_range = s_ref[1]
    x = x_ref[...].astype(jnp.float32)
    d_norm = (x - dmin) * inv_range
    out = x - beta * jnp.where(d_norm < (1.0 - tau), d_norm, 0.0)
    o_ref[...] = out.astype(o_ref.dtype)


# ----------------------------- wrapper ------------------------------------ #

def seu_pallas(depth, beta=0.3, tau=0.5, *, fused_max_bytes=_FUSED_MAX_F32_BYTES):
    """Pallas SEU forward. `depth` is any-shaped (e.g. NCHW) float tensor."""
    orig_shape = depth.shape
    dtype = depth.dtype
    beta = float(beta)
    tau = float(tau)

    n = depth.size
    pad = (-n) % 128
    x = depth.reshape(-1)
    if pad:
        # Pad to a lane multiple with the first element (min/max-neutral).
        # Only triggers for awkward sizes; costs one extra HBM copy then.
        x = jnp.concatenate([x, jnp.full((pad,), x[0], dtype)])
    rows = (n + pad) // 128
    x2d = x.reshape(rows, 128)                       # lane-dense (rows, 128)

    if rows * 128 * 4 <= fused_max_bytes:
        # -------- fused single-pass path (tensor resident in VMEM) -------- #
        out2d = pl.pallas_call(
            functools.partial(_seu_fused_kernel, beta=beta, tau=tau),
            out_shape=jax.ShapeDtypeStruct((rows, 128), dtype),
            in_specs=[pl.BlockSpec(memory_space=pltpu.MemorySpace.VMEM)],
            out_specs=pl.BlockSpec(memory_space=pltpu.MemorySpace.VMEM),
            compiler_params=pltpu.CompilerParams(vmem_limit_bytes=_VMEM_LIMIT),
        )(x2d)
    else:
        # ----------------------- two-pass streaming ----------------------- #
        tr = rows if rows <= _TR_MAX else _TR_MAX
        nb = pl.cdiv(rows, tr)
        needs_row_mask = (rows % tr) != 0

        # Pass 1: per-block min/max partials, fully parallel across blocks
        # (both TensorCores stream HBM on v7x).
        mins, maxs = pl.pallas_call(
            functools.partial(_minmax_partial_kernel, total_rows=rows,
                              block_rows=tr, needs_row_mask=needs_row_mask),
            out_shape=(jax.ShapeDtypeStruct((nb, 8, 128), jnp.float32),
                       jax.ShapeDtypeStruct((nb, 8, 128), jnp.float32)),
            grid=(nb,),
            in_specs=[pl.BlockSpec((tr, 128), lambda i: (i, 0))],
            out_specs=(pl.BlockSpec((1, 8, 128), lambda i: (i, 0, 0)),
                       pl.BlockSpec((1, 8, 128), lambda i: (i, 0, 0))),
            compiler_params=pltpu.CompilerParams(
                dimension_semantics=("parallel",),
                vmem_limit_bytes=_VMEM_LIMIT),
        )(x2d)

        # Tiny final reduction + scalar prep done once by XLA.
        dmin = jnp.min(mins)
        dmax = jnp.max(maxs)
        scalars = jnp.stack(
            [dmin, 1.0 / (dmax - dmin + jnp.float32(1e-8))]).astype(jnp.float32)

        # Pass 2: tiled elementwise refinement; [dmin, inv_range] in SMEM.
        out2d = pl.pallas_call(
            functools.partial(_seu_kernel, beta=beta, tau=tau),
            out_shape=jax.ShapeDtypeStruct((rows, 128), dtype),
            grid=(nb,),
            in_specs=[pl.BlockSpec(memory_space=pltpu.MemorySpace.SMEM),
                      pl.BlockSpec((tr, 128), lambda i: (i, 0))],
            out_specs=pl.BlockSpec((tr, 128), lambda i: (i, 0)),
            compiler_params=pltpu.CompilerParams(
                dimension_semantics=("parallel",),
                vmem_limit_bytes=_VMEM_LIMIT),
        )(scalars, x2d)

    if pad:
        return out2d.reshape(-1)[:n].reshape(orig_shape)
    return out2d.reshape(orig_shape)


# --------------------------- pure-JAX reference ---------------------------- #

def seu_ref(depth, beta=0.3, tau=0.5):
    dmin = depth.min()
    dmax = depth.max()
    d_norm = (depth - dmin) / (dmax - dmin + 1e-8)
    f = 1.0 - d_norm
    m = (f > tau).astype(jnp.float32)
    return depth - beta * m * (1.0 - f)


# --------------------------------- main ------------------------------------ #

if __name__ == "__main__":
    key = jax.random.PRNGKey(0)
    # Small depth map, NCHW with a single depth channel.
    depth = jax.random.uniform(key, (2, 1, 16, 16), dtype=jnp.float32,
                               minval=0.1, maxval=10.0)
    ref = seu_ref(depth, beta=0.3, tau=0.5)

    # 1) Default dispatch -> fused single-pass VMEM-resident path.
    out = jax.block_until_ready(seu_pallas(depth, beta=0.3, tau=0.5))
    assert out.shape == depth.shape and out.dtype == depth.dtype
    assert jnp.allclose(out, ref, atol=1e-5, rtol=1e-5), "fused path mismatch"

    # 2) Force the two-pass streaming path (same semantics) on the same input.
    out2 = jax.block_until_ready(
        seu_pallas(depth, beta=0.3, tau=0.5, fused_max_bytes=0))
    assert jnp.allclose(out2, ref, atol=1e-5, rtol=1e-5), "two-pass mismatch"

    # 3) Non-128-multiple size exercises the pad/slice glue.
    key2 = jax.random.PRNGKey(1)
    depth3 = jax.random.uniform(key2, (1, 1, 7, 9), dtype=jnp.float32,
                                minval=0.1, maxval=5.0)
    out3 = jax.block_until_ready(seu_pallas(depth3, beta=0.3, tau=0.5))
    assert jnp.allclose(out3, seu_ref(depth3, beta=0.3, tau=0.5),
                        atol=1e-5, rtol=1e-5), "padded path mismatch"

    print("KERNEL_OK")
</pallas_src>

<mosaic_0001>
module attributes {stable_mosaic.version = 11 : i64} {
  func.func @_seu_fused_kernel(%arg0: memref<4x128xf32, #tpu.memory_space<vmem>>, %arg1: memref<4x128xf32, #tpu.memory_space<vmem>>) attributes {dimension_semantics = [], scalar_prefetch = 0 : i64, scratch_operands = 0 : i64, tpu.core_type = #tpu.core_type<tc>} {
    %c0 = arith.constant 0 : index
    %c0_0 = arith.constant 0 : index
    %0 = vector.load %arg0[%c0, %c0_0] : memref<4x128xf32, #tpu.memory_space<vmem>>, vector<4x128xf32>
    %1 = vector.shape_cast %0 : vector<4x128xf32> to vector<1x4x128xf32>
    %cst = arith.constant dense<0x7F800000> : vector<1xf32>
    %2 = vector.multi_reduction <minimumf>, %1, %cst [1, 2] : vector<1x4x128xf32> to vector<1xf32>
    %3 = vector.shape_cast %2 : vector<1xf32> to vector<1x1x1xf32>
    %4 = vector.extract %3[0, 0, 0] : f32 from vector<1x1x1xf32>
    %5 = vector.shape_cast %0 : vector<4x128xf32> to vector<1x4x128xf32>
    %cst_1 = arith.constant dense<0xFF800000> : vector<1xf32>
    %6 = vector.multi_reduction <maximumf>, %5, %cst_1 [1, 2] : vector<1x4x128xf32> to vector<1xf32>
    %7 = vector.shape_cast %6 : vector<1xf32> to vector<1x1x1xf32>
    %8 = vector.extract %7[0, 0, 0] : f32 from vector<1x1x1xf32>
    %9 = arith.subf %8, %4 : f32
    %cst_2 = arith.constant 9.99999993E-9 : f32
    %10 = arith.addf %9, %cst_2 : f32
    %cst_3 = arith.constant 1.000000e+00 : f32
    %11 = arith.divf %cst_3, %10 : f32
    %12 = vector.broadcast %4 : f32 to vector<4x128xf32>
    %13 = arith.subf %0, %12 : vector<4x128xf32>
    %14 = vector.broadcast %11 : f32 to vector<4x128xf32>
    %15 = arith.mulf %13, %14 : vector<4x128xf32>
    %cst_4 = arith.constant 5.000000e-01 : f32
    %16 = vector.broadcast %cst_4 : f32 to vector<4x128xf32>
    %17 = arith.cmpf olt, %15, %16 : vector<4x128xf32>
    %cst_5 = arith.constant 0.000000e+00 : f32
    %18 = vector.broadcast %cst_5 : f32 to vector<4x128xf32>
    %19 = arith.select %17, %15, %18 : vector<4x128xi1>, vector<4x128xf32>
    %cst_6 = arith.constant 3.000000e-01 : f32
    %20 = vector.broadcast %cst_6 : f32 to vector<4x128xf32>
    %21 = arith.mulf %20, %19 : vector<4x128xf32>
    %22 = arith.subf %0, %21 : vector<4x128xf32>
    %c0_7 = arith.constant 0 : index
    %c0_8 = arith.constant 0 : index
    %23 = vector.load %arg1[%c0_7, %c0_8] : memref<4x128xf32, #tpu.memory_space<vmem>>, vector<4x128xf32>
    tpu.vector_store %arg1[%c0_7, %c0_8], %22 {strides = array<i32>} : memref<4x128xf32, #tpu.memory_space<vmem>>, vector<4x128xf32>,
    return
  }
}

</mosaic_0001>

<bundles_post_ra>
// kernel: tpu_custom_call.1
= control target key start
LH: loop header
LB: loop body
LE: loop exit
PB: predicated region body
PF: predicated region fallthrough
CT: control target
= control target key end

     0   :  { %6 = vsyncpa [#allocation3], 0  ;;  %s166_s0 = inlined_call_operand.hbm [shape: f32[4,128], index: 0, kind: input, shape index: {}]   ;;  %s167_s1 = inlined_call_operand.hbm [shape: f32[4,128], index: 1, kind: output, shape index: {}]  }
   0x1   :  { %7 = vsyncpa [#allocation4], 0  ;;  %s130_s6 = smov [#allocation2]   ;;  %s82_s10 = scalar_lea.hbm %s166_s0, 64 }
   0x2   :  { %s14_s7 = sshll.u32 %s130_s6, 4  ;;  %p83_p0 = scmp.ne.s32.totalorder %s166_s0, %s82_s10  ;;  %s15_s7 = int_to_ptr.vmem [resolvable:$true] %s14_s7 }
   0x3   :  { %p86_p1 = scmp.lt.u32.totalorder %s82_s10, %s166_s0 }
   0x5   :  { %p88_p2 = pnand %p86_p1, %p83_p0 }
   0x7   :  { %91 = shalt.err (!%p88_p2)
}
   0x8   :  { %s92_s15 = scalar_lea.vmem %s15_s7, 64  ;;  %p97_p4 = scmp.lt.s32.totalorder %s15_s7, %s15_s7 }
   0x9   :  { %p93_p3 = scmp.ne.s32.totalorder %s15_s7, %s92_s15  ;;  %p98_p5 = scmp.lt.s32.totalorder %s92_s15, %s92_s15 }
   0xb   :  { %p99_p6 = por %p98_p5, %p97_p4 }
   0xd   :  { %p100_p7 = pnand %p99_p6, %p93_p3 }
   0xf   :  { %103 = shalt.err (!%p100_p7)
}
  0x10   :  { %17 = dma.hbm_to_vmem [thread:$0]  %s166_s0, 64, %s15_s7, [#allocation3]  }
  0x11   :  { %126 = dma.done.wait [#allocation3], 64  }
  0x12   :  { %127 = vsyncadd [#allocation3], 4294967232  ;;  %vm22_vm0 = vcmask 1043456   ;;  %v21_v0 = vld [vmem:[#allocation2] sm:$0xf]  ;;  %s131_s22 = smov [#allocation5]  }
  0x13   :  { %v23_v1 = vsel %vm22_vm0, %v21_v0, inf  ;;  %v33_v2 = vsel %vm22_vm0, %v21_v0, -inf  ;;  %s63_s23 = sshll.u32 %s131_s22, 4  ;;  %s64_s23 = int_to_ptr.vmem [resolvable:$true] %s63_s23 }
  0x14   :  { %24 = vmin.xlane.f32.xlu0 %v23_v1  ;;  %s104_s24 = scalar_lea.vmem %s64_s23, 64  ;;  %p109_p9 = scmp.lt.s32.totalorder %s64_s23, %s64_s23 }
  0x15   :  { %p105_p8 = scmp.ne.s32.totalorder %s64_s23, %s104_s24  ;;  %p110_p10 = scmp.lt.s32.totalorder %s104_s24, %s104_s24 }
  0x17   :  { %p111_p11 = por %p110_p10, %p109_p9 }
  0x18   :  { %34 = vmax.xlane.f32.xlu0 %v33_v2 }
  0x19   :  { %p112_p12 = pnand %p111_p11, %p105_p8 }
  0xa1   :  { %v25_v3 = vpop.xlane.xlu0 %24 }
  0xa2   :  { %v26_v4 = vrot.slane %v25_v3, 4 }
  0xa4   :  { %v27_v5 = vmin.f32 %v25_v3, %v26_v4 }
  0xa5   :  { %v35_v6 = vpop.xlane.xlu0 %34 }
  0xa6   :  { %v28_v7 = vrot.slane %v27_v5, 2  ;;  %v36_v8 = vrot.slane %v35_v6, 4 }
  0xa8   :  { %v37_v9 = vmax.f32 %v35_v6, %v36_v8  ;;  %v29_v10 = vmin.f32 %v27_v5, %v28_v7 }
  0xaa   :  { %v38_v11 = vrot.slane %v37_v9, 2  ;;  %v30_v12 = vrot.slane %v29_v10, 1 }
  0xac   :  { %v39_v13 = vmax.f32 %v37_v9, %v38_v11  ;;  %v31_v14 = vmin.f32 %v29_v10, %v30_v12 }
  0xae   :  { %72 = vpush %v31_v14  ;;  %v40_v15 = vrot.slane %v39_v13, 1 }
  0xb0   :  { %v41_v16 = vmax.f32 %v39_v13, %v40_v15 }
  0xb2   :  { %74 = vpush %v41_v16 }
  0xdf   :  { %s73_s0 = spop %72 }
  0xe0   :  { %v48_v19 = vstv %s73_s0 }
  0xe1   :  { %v49_v20 = vsub.f32 %v21_v0, %v48_v19 }
  0xe3   :  { %s75_s18 = spop %74 }
  0xe4   :  { %s43_s19 = ssub.f32 %s75_s18, %s73_s0 }
  0xe6   :  { %s44_s20 = sadd.f32 1e-08, %s43_s19 }
  0xe8   :  { %v45_v17 = vstv %s44_s20 }
  0xe9   :  { %80 = vrcp.f32 %v45_v17 }
  0xf3   :  { %v81_v18 = vpop.eup %80 }
  0xf4   :  { %76 = vpush %v81_v18 }
 0x125   :  { %s77_s21 = spop %76 }
 0x126   :  { %v50_v21 = vstv %s77_s21 }
 0x127   :  { %v51_v22 = vmul.f32 %v50_v21, %v49_v20 }
 0x129   :  { %vm52_vm1 = vcmp.lt.f32.partialorder %v51_v22, 0.5 }
 0x12a   :  { %v53_v23 = vsel %vm52_vm1, %v51_v22, 0.0 }
 0x12b   :  { %v54_v24 = vmul.f32 0.3, %v53_v23 }
 0x12d   :  { %v55_v25 = vsub.f32 %v21_v0, %v54_v24 }
 0x12f   :  { %56 = vst [vmem:[#allocation5] sm:$0xf] %v55_v25 }
 0x130   :  { %115 = shalt.err (!%p112_p12)
}
 0x131   :  { %s116_s27 = scalar_lea.hbm %s167_s1, 64 }
 0x132   :  { %p117_p13 = scmp.ne.s32.totalorder %s167_s1, %s116_s27  ;;  %p120_p0 = scmp.lt.u32.totalorder %s116_s27, %s167_s1 }
 0x134   :  { %p122_p1 = pnand %p120_p0, %p117_p13 }
 0x136   :  { %125 = shalt.err (!%p122_p1)
}
 0x137   :  { %66 = dma.vmem_to_hbm [thread:$0]  %s64_s23, 64, %s167_s1, [#allocation4]  }
 0x138   :  { %128 = dma.done.wait [#allocation4], 64  }
 0x139   :  { %129 = vsyncadd [#allocation4], 4294967232 }
 0x13a   :  { %70 = vsyncpa [#allocation3], 1 }
 0x13b   :  { %71 = vsyncpa [#allocation4], 1 }

</bundles_post_ra>
